<compile_context>
chip_gen: v7x
topology: tpu7x:2x2x1
jax: 0.10.0
libtpu: 0.0.40
codegen_flags: <defaults>
</compile_context>

<pallas_src>
import functools

import numpy as np
import jax
import jax.numpy as jnp
from jax import lax
from jax.experimental import pallas as pl
from jax.experimental.pallas import tpu as pltpu


def _round_up(x, m):
    return (x + m - 1) // m * m


# --------------------------------------------------------------------------
# Fused conv-stack kernel:  [k=3 conv + ReLU] * n_k3  ->  k=1 conv
# One (packed) batch group per grid step; intermediates stay in VMEM/vregs.
# --------------------------------------------------------------------------
def _fused_conv_stack_kernel(*refs, n_k3, seq_len, packed):
    x_ref = refs[0]
    n_w = 4 * n_k3 + 2                         # (wl, wc, wr, b) * n_k3 + (w1, b1)
    w_refs = refs[1:1 + n_w]
    o_ref = refs[1 + n_w]

    rows = x_ref.shape[1]                      # packed rows = bt * seq_len
    h = x_ref[0].astype(jnp.bfloat16)          # (rows, Cin) -> bf16 MXU operands

    if packed and n_k3 > 0:
        # hoisted once: position of each row inside its sub-sequence
        pos = lax.broadcasted_iota(jnp.int32, (rows, 1), 0) % seq_len
        m_first = pos == 0
        m_last = pos == seq_len - 1

    for l in range(n_k3):
        w_l = w_refs[4 * l][...]               # (Win_l, Cpad) bf16   tap x[t-1]
        w_c = w_refs[4 * l + 1][...]           # (Win_l, Cpad) bf16   tap x[t]
        w_r = w_refs[4 * l + 2][...]           # (Win_l, Cpad) bf16   tap x[t+1]
        b = w_refs[4 * l + 3][...]             # (1, Cpad) f32

        width = h.shape[-1]
        zrow = jnp.zeros((1, width), h.dtype)
        hp = jnp.concatenate([zrow, h[:-1, :]], axis=0)   # x[t-1], zero at t=0
        hn = jnp.concatenate([h[1:, :], zrow], axis=0)    # x[t+1], zero at t=rows-1
        if packed:
            # zero the halo across packed-sequence boundaries as well
            hp = jnp.where(m_first, 0.0, hp)
            hn = jnp.where(m_last, 0.0, hn)

        # three accumulating dots instead of a (rows, 3*width) im2col concat
        acc = jnp.dot(h, w_c, preferred_element_type=jnp.float32)
        acc = acc + jnp.dot(hp, w_l, preferred_element_type=jnp.float32)
        acc = acc + jnp.dot(hn, w_r, preferred_element_type=jnp.float32)
        acc = acc + b
        h = jnp.maximum(acc, 0.0).astype(jnp.bfloat16)     # ReLU; dropout = identity

    w1 = w_refs[4 * n_k3][...]                 # (Win_last, Cpad) bf16
    b1 = w_refs[4 * n_k3 + 1][...]             # (1, Cpad) f32
    y = jnp.dot(h, w1, preferred_element_type=jnp.float32) + b1
    o_ref[0] = y.astype(o_ref.dtype)


def fused_conv_stack(x, k3_params, k1_params, stride, cpad):
    """x: (B, T, Cin) -> (B, T_out, cpad); padded channels are exactly zero."""
    B, T, Cin = x.shape
    n_k3 = len(k3_params)

    # Pack batch elements per grid step so the matmul M-dim is >= ~256 for
    # short sequences (keeps the 256x256 MXU busy).  Wrapper-side reshape only.
    bt = 1
    if T < 256:
        cap = max(1, 256 // T)
        for d in range(min(B, cap), 0, -1):
            if B % d == 0:
                bt = d
                break
    nb = B // bt
    rows = bt * T
    xp = x.reshape(nb, rows, Cin)

    in_specs = [pl.BlockSpec((1, rows, Cin), lambda i: (i, 0, 0))]
    args = []
    for p in list(k3_params) + [k1_params]:
        for a in p:
            in_specs.append(pl.BlockSpec(a.shape, lambda i: (0, 0)))   # resident
            args.append(a)

    kernel = functools.partial(_fused_conv_stack_kernel, n_k3=n_k3,
                               seq_len=T, packed=(bt > 1))
    # TODO(synk): for very long sequences (T >~ 8k frames) add a T-tile grid
    # axis with an n_k3-row halo so the block fits v7x's 64 MiB VMEM.
    y = pl.pallas_call(
        kernel,
        out_shape=jax.ShapeDtypeStruct((nb, rows, cpad), jnp.float32),
        grid=(nb,),
        in_specs=in_specs,
        out_specs=pl.BlockSpec((1, rows, cpad), lambda i: (i, 0, 0)),
        compiler_params=pltpu.CompilerParams(dimension_semantics=("parallel",)),
    )(xp, *args)

    y = y.reshape(B, T, cpad)
    if stride > 1:
        # TODO(synk): fold the stride into the kernel (strided VMEM read or
        # reshape-into-weight trick) to drop this strided XLA pass on the
        # hottest paths; kept outside for portable lowering.
        y = y[:, ::stride, :]
    return y


# --------------------------------------------------------------------------
# Alignment log-prob kernel: pairwise L2 distance, score, text-length mask,
# log_softmax over T_text.  Tiled over T_feat; T_text padded to 128 so the
# dominant output store is lane-dense.
# --------------------------------------------------------------------------
def _align_kernel(tl_ref, f_ref, t_ref, o_ref, t2_ref, *, temperature):
    b = pl.program_id(0)
    t = t_ref[0]                                              # (Tt_pad, C) f32

    @pl.when(pl.program_id(1) == 0)
    def _():
        # text squared norms, computed once per batch (tf axis is "arbitrary",
        # so this always runs before any other tf step of the same batch).
        ones = jnp.ones((1, t.shape[-1]), jnp.float32)
        t2_ref[...] = lax.dot_general(ones, t * t, (((1,), (1,)), ((), ())),
                                      preferred_element_type=jnp.float32)

    f = f_ref[0]                                              # (TILE_F, C) f32
    f2 = jnp.sum(f * f, axis=-1, keepdims=True)               # (TILE_F, 1)
    ft = lax.dot_general(f, t, (((1,), (1,)), ((), ())),
                         preferred_element_type=jnp.float32)  # (TILE_F, Tt_pad)
    d2 = jnp.maximum(f2 + t2_ref[...] - 2.0 * ft, 0.0)
    score = -temperature * jnp.sqrt(d2)

    col = lax.broadcasted_iota(jnp.int32, score.shape, 1)
    valid = col < tl_ref[b]
    score = jnp.where(valid, score, -1e30)     # finite mask -> NaN-safe softmax

    m = jnp.max(score, axis=-1, keepdims=True)
    lse = jnp.log(jnp.sum(jnp.exp(score - m), axis=-1, keepdims=True)) + m
    out = jnp.where(valid, score - lse, -jnp.inf)   # reference writes -inf cols
    o_ref[0] = out.astype(o_ref.dtype)


def alignment_log_prob(feat_emb, text_emb, text_lengths, temperature):
    """feat_emb: (B, Tf, C), text_emb: (B, Tt, C) -> attn_lprob (B, Tf, Tt) f32."""
    B, Tf, C = feat_emb.shape
    Tt = text_emb.shape[1]
    tt_pad = _round_up(Tt, 128)                # lane-dense output / text rows
    if tt_pad != Tt:
        text_emb = jnp.pad(text_emb, ((0, 0), (0, tt_pad - Tt), (0, 0)))

    tile_f = min(512, _round_up(Tf, 8))
    n_tf = pl.cdiv(Tf, tile_f)
    kernel = functools.partial(_align_kernel, temperature=temperature)
    grid_spec = pltpu.PrefetchScalarGridSpec(
        num_scalar_prefetch=1,
        grid=(B, n_tf),
        in_specs=[
            pl.BlockSpec((1, tile_f, C), lambda b, tf, tl: (b, tf, 0)),
            pl.BlockSpec((1, tt_pad, C), lambda b, tf, tl: (b, 0, 0)),  # resident
        ],
        out_specs=pl.BlockSpec((1, tile_f, tt_pad), lambda b, tf, tl: (b, tf, 0)),
        scratch_shapes=[pltpu.VMEM((1, tt_pad), jnp.float32)],
    )
    out = pl.pallas_call(
        kernel,
        out_shape=jax.ShapeDtypeStruct((B, Tf, tt_pad), jnp.float32),
        grid_spec=grid_spec,
        compiler_params=pltpu.CompilerParams(
            dimension_semantics=("parallel", "arbitrary")),
    )(text_lengths.astype(jnp.int32), feat_emb, text_emb)
    return out[:, :, :Tt]


# --------------------------------------------------------------------------
# Host-side Viterbi duration extraction (sequential DP — not a TPU hot path)
# --------------------------------------------------------------------------
# TODO(synk): monotonic alignment search is a data-dependent sequential DP;
# kept on host in numpy (mirrors the reference implementation exactly).
def _monotonic_alignment_search(attn_lprob):
    T_feat, T_text = attn_lprob.shape
    Q = np.full((T_text, T_feat), fill_value=-np.inf)
    log_prob = attn_lprob.transpose(1, 0)
    for j in range(T_feat):
        Q[0, j] = log_prob[0, : j + 1].sum()
    for j in range(1, T_feat):
        for i in range(1, min(j + 1, T_text)):
            Q[i, j] = max(Q[i - 1, j - 1], Q[i, j - 1]) + log_prob[i, j]
    A = np.full((T_feat,), fill_value=T_text - 1)
    for j in range(T_feat - 2, -1, -1):
        i_a = A[j + 1] - 1
        i_b = A[j + 1]
        if i_b == 0:
            argmax_i = 0
        elif Q[i_a, j] >= Q[i_b, j]:
            argmax_i = i_a
        else:
            argmax_i = i_b
        A[j] = argmax_i
    return A


def viterbi_decode_np(attn_lprob, text_lengths, feat_lengths):
    B, _, T_text = attn_lprob.shape
    durations = np.zeros((B, T_text), dtype=np.int64)
    for b in range(B):
        assert feat_lengths[b] > 0 and text_lengths[b] > 0
        cur = attn_lprob[b, : feat_lengths[b], : text_lengths[b]].astype(np.float64)
        viterbi = _monotonic_alignment_search(cur)
        _durations = np.bincount(viterbi)
        durations[b, : len(_durations)] = _durations
    return durations


def postprocess_alignment_np(attn_hard_dur, text_lengths, feat_lengths, reduction_factor):
    attn_hard_dur = attn_hard_dur * reduction_factor
    B, _ = attn_hard_dur.shape
    dur_cumsum = np.cumsum(attn_hard_dur, axis=1)
    for b in range(B):
        for t in range(int(text_lengths[b])):
            if dur_cumsum[b, t] >= feat_lengths[b]:
                if t == 0:
                    attn_hard_dur[b, t] = feat_lengths[b]
                else:
                    attn_hard_dur[b, t] = feat_lengths[b] - dur_cumsum[b, t - 1]
                if t < text_lengths[b] - 1:
                    attn_hard_dur[b, t + 1:] = 0
                break
    return attn_hard_dur


# --------------------------------------------------------------------------
# UnitY2AlignmentEncoder (Pallas forward)
# --------------------------------------------------------------------------
class UnitY2AlignmentEncoderPallas:
    def __init__(self, embed_dim, feat_dim, text_layers, feat_layers,
                 temperature, reduction_factor, key):
        self.embed_dim = embed_dim
        self.feat_dim = feat_dim
        self.temperature = float(temperature)
        self.reduction_factor = int(reduction_factor)
        self.cpad = _round_up(embed_dim, 128)   # lane-dense channel width

        # Deterministic synthetic parameters (PyTorch Conv1d layout: (Cout, Cin, K)).
        def init_conv(k, cout, cin, ksz):
            kw, kb = jax.random.split(k)
            scale = 1.0 / np.sqrt(cin * ksz)
            w = jax.random.uniform(kw, (cout, cin, ksz), jnp.float32, -scale, scale)
            b = jax.random.uniform(kb, (cout,), jnp.float32, -scale, scale)
            return w, b

        keys = jax.random.split(key, text_layers + feat_layers)
        t_raw = []
        for i in range(text_layers):
            ksz = 3 if i < text_layers - 1 else 1
            t_raw.append(init_conv(keys[i], embed_dim, embed_dim, ksz))
        f_raw = []
        in_dim = feat_dim
        for i in range(feat_layers):
            ksz = 3 if i < feat_layers - 1 else 1
            f_raw.append(init_conv(keys[text_layers + i], embed_dim, in_dim, ksz))
            in_dim = embed_dim

        self.t_k3, self.t_k1 = self._build_fused_stack(t_raw, embed_dim)
        self.f_k3, self.f_k1 = self._build_fused_stack(f_raw, feat_dim)

    def _build_fused_stack(self, raw, in_dim):
        """Convert PyTorch-layout conv weights to per-tap matmul slabs (bf16),
        zero-padding Cin (for layers fed by padded activations) and Cout to cpad."""
        cpad = self.cpad
        k3 = []
        win = in_dim
        for (w, b) in raw[:-1]:                       # k=3 layers
            cout, cin, _ = w.shape
            taps = []
            for k in range(3):                        # k=0: x[t-1], 1: x[t], 2: x[t+1]
                wt = jnp.transpose(w[:, :, k], (1, 0))           # (cin, cout)
                wt = jnp.pad(wt, ((0, win - cin), (0, cpad - cout)))
                taps.append(wt.astype(jnp.bfloat16))
            br = jnp.pad(b, (0, cpad - cout)).reshape(1, cpad).astype(jnp.float32)
            k3.append((taps[0], taps[1], taps[2], br))
            win = cpad
        w, b = raw[-1]                                # final k=1 layer
        cout, cin, _ = w.shape
        wr = jnp.pad(jnp.transpose(w[:, :, 0], (1, 0)),
                     ((0, win - cin), (0, cpad - cout))).astype(jnp.bfloat16)
        br = jnp.pad(b, (0, cpad - cout)).reshape(1, cpad).astype(jnp.float32)
        return k3, (wr, br)

    def __call__(self, text_emb, feat_emb, text_lengths, feat_lengths):
        _feat_lengths = np.asarray(feat_lengths).copy()
        feat_lengths_np = np.asarray(feat_lengths)
        text_lengths_np = np.asarray(text_lengths)
        if self.reduction_factor > 1:
            feat_lengths_np = np.ceil(
                feat_lengths_np / self.reduction_factor).astype(np.int64)

        # ---- fused conv stacks (dropout = identity in eval) ----
        text_h = fused_conv_stack(text_emb, self.t_k3, self.t_k1,
                                  stride=1, cpad=self.cpad)
        feat_h = fused_conv_stack(feat_emb, self.f_k3, self.f_k1,
                                  stride=self.reduction_factor, cpad=self.cpad)

        # ---- pairwise L2 distance, masking, log_softmax (Pallas) ----
        # (padded channels are exactly zero in both -> distance unchanged)
        attn_lprob = alignment_log_prob(feat_h, text_h, text_lengths,
                                        self.temperature)

        # ---- host-side monotonic alignment search ----
        attn_lprob_host = np.asarray(jax.device_get(attn_lprob))
        attn_hard_dur = viterbi_decode_np(attn_lprob_host, text_lengths_np,
                                          feat_lengths_np)
        if self.reduction_factor > 1:
            attn_hard_dur = postprocess_alignment_np(
                attn_hard_dur, text_lengths_np, _feat_lengths,
                self.reduction_factor)

        return attn_lprob, jnp.asarray(attn_hard_dur)


# --------------------------------------------------------------------------
if __name__ == "__main__":
    B = 2
    T_text = 8
    T_feat = 16
    embed_dim = 32
    feat_dim = 16
    text_layers = 2
    feat_layers = 3
    temperature = 1.0
    reduction_factor = 2

    root = jax.random.PRNGKey(0)
    k_model, k_text, k_feat = jax.random.split(root, 3)

    model = UnitY2AlignmentEncoderPallas(
        embed_dim=embed_dim, feat_dim=feat_dim,
        text_layers=text_layers, feat_layers=feat_layers,
        temperature=temperature, reduction_factor=reduction_factor,
        key=k_model)

    text_emb = jax.random.normal(k_text, (B, T_text, embed_dim), jnp.float32)
    feat_emb = jax.random.normal(k_feat, (B, T_feat, feat_dim), jnp.float32)
    text_lengths = jnp.array([8, 6], dtype=jnp.int32)
    feat_lengths = jnp.array([16, 12], dtype=jnp.int32)

    attn_lprob, attn_hard_dur = model(text_emb, feat_emb, text_lengths, feat_lengths)
    jax.block_until_ready(attn_lprob)
    jax.block_until_ready(attn_hard_dur)

    assert attn_lprob.shape == (B, T_feat // reduction_factor, T_text)
    assert attn_hard_dur.shape == (B, T_text)
    print("KERNEL_OK")
</pallas_src>

<mosaic_0001>
module attributes {stable_mosaic.version = 11 : i64} {
  func.func @_fused_conv_stack_kernel(%arg0: i32, %arg1: memref<1x16x32xf32, #tpu.memory_space<vmem>>, %arg2: memref<32x128xbf16, #tpu.memory_space<vmem>>, %arg3: memref<32x128xbf16, #tpu.memory_space<vmem>>, %arg4: memref<32x128xbf16, #tpu.memory_space<vmem>>, %arg5: memref<1x128xf32, #tpu.memory_space<vmem>>, %arg6: memref<128x128xbf16, #tpu.memory_space<vmem>>, %arg7: memref<1x128xf32, #tpu.memory_space<vmem>>, %arg8: memref<1x16x128xf32, #tpu.memory_space<vmem>>) attributes {dimension_semantics = [#tpu.dimension_semantics<parallel>], iteration_bounds = array<i64: 1>, scalar_prefetch = 0 : i64, scratch_operands = 0 : i64, tpu.core_type = #tpu.core_type<tc>, window_params = [{transform_indices = @transform_0, window_bounds = array<i64: 1, 16, 32>}, {pipeline_mode = #tpu.pipeline_mode<synchronous>, transform_indices = @transform_1, window_bounds = array<i64: 32, 128>}, {pipeline_mode = #tpu.pipeline_mode<synchronous>, transform_indices = @transform_2, window_bounds = array<i64: 32, 128>}, {pipeline_mode = #tpu.pipeline_mode<synchronous>, transform_indices = @transform_3, window_bounds = array<i64: 32, 128>}, {pipeline_mode = #tpu.pipeline_mode<synchronous>, transform_indices = @transform_4, window_bounds = array<i64: 1, 128>}, {pipeline_mode = #tpu.pipeline_mode<synchronous>, transform_indices = @transform_5, window_bounds = array<i64: 128, 128>}, {pipeline_mode = #tpu.pipeline_mode<synchronous>, transform_indices = @transform_6, window_bounds = array<i64: 1, 128>}, {transform_indices = @transform_7, window_bounds = array<i64: 1, 16, 128>}]} {
    %c0 = arith.constant 0 : index
    %c0_0 = arith.constant 0 : index
    %c0_1 = arith.constant 0 : index
    %0 = vector.load %arg1[%c0, %c0_0, %c0_1] : memref<1x16x32xf32, #tpu.memory_space<vmem>>, vector<1x16x32xf32>
    %1 = vector.shape_cast %0 : vector<1x16x32xf32> to vector<16x32xf32>
    %2 = arith.truncf %1 : vector<16x32xf32> to vector<16x32xbf16>
    %3 = tpu.iota {dimensions = array<i32: 0>} : vector<16x1xi32>
    %c8_i32 = arith.constant 8 : i32
    %c0_i32 = arith.constant 0 : i32
    %4 = arith.cmpi eq, %c8_i32, %c0_i32 : i32
    %c1_i32 = arith.constant 1 : i32
    %5 = arith.select %4, %c1_i32, %c8_i32 : i32
    %6 = vector.broadcast %5 : i32 to vector<16x1xi32>
    %7 = arith.remsi %3, %6 : vector<16x1xi32>
    %c0_i32_2 = arith.constant 0 : i32
    %8 = vector.broadcast %c0_i32_2 : i32 to vector<16x1xi32>
    %9 = arith.cmpi ne, %7, %8 : vector<16x1xi32>
    %c0_i32_3 = arith.constant 0 : i32
    %10 = vector.broadcast %c0_i32_3 : i32 to vector<16x1xi32>
    %11 = arith.cmpi slt, %7, %10 : vector<16x1xi32>
    %c0_i32_4 = arith.constant 0 : i32
    %12 = arith.cmpi slt, %5, %c0_i32_4 : i32
    %13 = vector.broadcast %12 : i1 to vector<16x1xi1>
    %14 = vector.broadcast %13 : vector<16x1xi1> to vector<16x1xi1>
    %15 = arith.xori %11, %14 : vector<16x1xi1>
    %16 = arith.andi %15, %9 : vector<16x1xi1>
    %17 = vector.broadcast %5 : i32 to vector<16x1xi32>
    %18 = arith.addi %7, %17 : vector<16x1xi32>
    %19 = arith.select %16, %18, %7 : vector<16x1xi1>, vector<16x1xi32>
    %c0_i32_5 = arith.constant 0 : i32
    %20 = vector.broadcast %c0_i32_5 : i32 to vector<16x1xi32>
    %21 = arith.cmpi eq, %19, %20 : vector<16x1xi32>
    %c7_i32 = arith.constant 7 : i32
    %22 = vector.broadcast %c7_i32 : i32 to vector<16x1xi32>
    %23 = arith.cmpi eq, %19, %22 : vector<16x1xi32>
    %c0_6 = arith.constant 0 : index
    %c0_7 = arith.constant 0 : index
    %24 = vector.load %arg2[%c0_6, %c0_7] : memref<32x128xbf16, #tpu.memory_space<vmem>>, vector<32x128xbf16>
    %c0_8 = arith.constant 0 : index
    %c0_9 = arith.constant 0 : index
    %25 = vector.load %arg3[%c0_8, %c0_9] : memref<32x128xbf16, #tpu.memory_space<vmem>>, vector<32x128xbf16>
    %c0_10 = arith.constant 0 : index
    %c0_11 = arith.constant 0 : index
    %26 = vector.load %arg4[%c0_10, %c0_11] : memref<32x128xbf16, #tpu.memory_space<vmem>>, vector<32x128xbf16>
    %c0_12 = arith.constant 0 : index
    %c0_13 = arith.constant 0 : index
    %27 = vector.load %arg5[%c0_12, %c0_13] : memref<1x128xf32, #tpu.memory_space<vmem>>, vector<1x128xf32>
    %cst = arith.constant 0.000000e+00 : bf16
    %28 = vector.broadcast %cst : bf16 to vector<1x32xbf16>
    %29 = vector.extract_strided_slice %2 {offsets = [0, 0], sizes = [15, 32], strides = [1, 1]} : vector<16x32xbf16> to vector<15x32xbf16>
    %30 = tpu.concatenate %28, %29 in 0 : vector<1x32xbf16>, vector<15x32xbf16> -> vector<16x32xbf16>
    %31 = vector.extract_strided_slice %2 {offsets = [1, 0], sizes = [15, 32], strides = [1, 1]} : vector<16x32xbf16> to vector<15x32xbf16>
    %32 = tpu.concatenate %31, %28 in 0 : vector<15x32xbf16>, vector<1x32xbf16> -> vector<16x32xbf16>
    %cst_14 = arith.constant 0.000000e+00 : f32
    %33 = arith.truncf %cst_14 : f32 to bf16
    %34 = vector.shape_cast %21 : vector<16x1xi1> to vector<16x1xi1>
    %35 = vector.broadcast %34 : vector<16x1xi1> to vector<16x32xi1>
    %36 = vector.broadcast %33 : bf16 to vector<16x32xbf16>
    %37 = arith.select %35, %36, %30 : vector<16x32xi1>, vector<16x32xbf16>
    %cst_15 = arith.constant 0.000000e+00 : f32
    %38 = arith.truncf %cst_15 : f32 to bf16
    %39 = vector.shape_cast %23 : vector<16x1xi1> to vector<16x1xi1>
    %40 = vector.broadcast %39 : vector<16x1xi1> to vector<16x32xi1>
    %41 = vector.broadcast %38 : bf16 to vector<16x32xbf16>
    %42 = arith.select %40, %41, %32 : vector<16x32xi1>, vector<16x32xbf16>
    %cst_16 = arith.constant dense<0.000000e+00> : vector<16x128xf32>
    %43 = tpu.matmul %2, %25, %cst_16 {dimension_numbers = #tpu.dot_dimension_numbers<[1], [0], [0], [1], [0, 0, 1, 1], [], []>} : vector<16x32xbf16>, vector<32x128xbf16>, vector<16x128xf32> -> vector<16x128xf32>
    %cst_17 = arith.constant dense<0.000000e+00> : vector<16x128xf32>
    %44 = tpu.matmul %37, %24, %cst_17 {dimension_numbers = #tpu.dot_dimension_numbers<[1], [0], [0], [1], [0, 0, 1, 1], [], []>} : vector<16x32xbf16>, vector<32x128xbf16>, vector<16x128xf32> -> vector<16x128xf32>
    %45 = arith.addf %43, %44 : vector<16x128xf32>
    %cst_18 = arith.constant dense<0.000000e+00> : vector<16x128xf32>
    %46 = tpu.matmul %42, %26, %cst_18 {dimension_numbers = #tpu.dot_dimension_numbers<[1], [0], [0], [1], [0, 0, 1, 1], [], []>} : vector<16x32xbf16>, vector<32x128xbf16>, vector<16x128xf32> -> vector<16x128xf32>
    %47 = arith.addf %45, %46 : vector<16x128xf32>
    %48 = vector.broadcast %27 : vector<1x128xf32> to vector<16x128xf32>
    %49 = arith.addf %47, %48 : vector<16x128xf32>
    %cst_19 = arith.constant 0.000000e+00 : f32
    %50 = vector.broadcast %cst_19 : f32 to vector<16x128xf32>
    %51 = arith.maximumf %49, %50 : vector<16x128xf32>
    %52 = arith.truncf %51 : vector<16x128xf32> to vector<16x128xbf16>
    %c0_20 = arith.constant 0 : index
    %c0_21 = arith.constant 0 : index
    %53 = vector.load %arg6[%c0_20, %c0_21] : memref<128x128xbf16, #tpu.memory_space<vmem>>, vector<128x128xbf16>
    %c0_22 = arith.constant 0 : index
    %c0_23 = arith.constant 0 : index
    %54 = vector.load %arg7[%c0_22, %c0_23] : memref<1x128xf32, #tpu.memory_space<vmem>>, vector<1x128xf32>
    %cst_24 = arith.constant dense<0.000000e+00> : vector<16x128xf32>
    %55 = tpu.matmul %52, %53, %cst_24 {dimension_numbers = #tpu.dot_dimension_numbers<[1], [0], [0], [1], [0, 0, 1, 1], [], []>} : vector<16x128xbf16>, vector<128x128xbf16>, vector<16x128xf32> -> vector<16x128xf32>
    %56 = vector.broadcast %54 : vector<1x128xf32> to vector<16x128xf32>
    %57 = arith.addf %55, %56 : vector<16x128xf32>
    %c0_25 = arith.constant 0 : index
    %c0_26 = arith.constant 0 : index
    %c0_27 = arith.constant 0 : index
    %58 = vector.load %arg8[%c0_25, %c0_26, %c0_27] : memref<1x16x128xf32, #tpu.memory_space<vmem>>, vector<1x16x128xf32>
    %59 = vector.shape_cast %58 : vector<1x16x128xf32> to vector<16x128xf32>
    %60 = vector.shape_cast %57 : vector<16x128xf32> to vector<1x16x128xf32>
    tpu.vector_store %arg8[%c0_25, %c0_26, %c0_27], %60 {strides = array<i32>} : memref<1x16x128xf32, #tpu.memory_space<vmem>>, vector<1x16x128xf32>,
    return
  }
  func.func @transform_0(%arg0: i32) -> (i32, i32, i32) {
    %c0_i32 = arith.constant 0 : i32
    %c0_i32_0 = arith.constant 0 : i32
    %c0_i32_1 = arith.constant 0 : i32
    return %arg0, %c0_i32, %c0_i32_0 : i32, i32, i32
  }
  func.func @transform_1(%arg0: i32) -> (i32, i32) {
    %c0_i32 = arith.constant 0 : i32
    %c0_i32_0 = arith.constant 0 : i32
    %c0_i32_1 = arith.constant 0 : i32
    return %c0_i32, %c0_i32_0 : i32, i32
  }
  func.func @transform_2(%arg0: i32) -> (i32, i32) {
    %c0_i32 = arith.constant 0 : i32
    %c0_i32_0 = arith.constant 0 : i32
    %c0_i32_1 = arith.constant 0 : i32
    return %c0_i32, %c0_i32_0 : i32, i32
  }
  func.func @transform_3(%arg0: i32) -> (i32, i32) {
    %c0_i32 = arith.constant 0 : i32
    %c0_i32_0 = arith.constant 0 : i32
    %c0_i32_1 = arith.constant 0 : i32
    return %c0_i32, %c0_i32_0 : i32, i32
  }
  func.func @transform_4(%arg0: i32) -> (i32, i32) {
    %c0_i32 = arith.constant 0 : i32
    %c0_i32_0 = arith.constant 0 : i32
    %c0_i32_1 = arith.constant 0 : i32
    return %c0_i32, %c0_i32_0 : i32, i32
  }
  func.func @transform_5(%arg0: i32) -> (i32, i32) {
    %c0_i32 = arith.constant 0 : i32
    %c0_i32_0 = arith.constant 0 : i32
    %c0_i32_1 = arith.constant 0 : i32
    return %c0_i32, %c0_i32_0 : i32, i32
  }
  func.func @transform_6(%arg0: i32) -> (i32, i32) {
    %c0_i32 = arith.constant 0 : i32
    %c0_i32_0 = arith.constant 0 : i32
    %c0_i32_1 = arith.constant 0 : i32
    return %c0_i32, %c0_i32_0 : i32, i32
  }
  func.func @transform_7(%arg0: i32) -> (i32, i32, i32) {
    %c0_i32 = arith.constant 0 : i32
    %c0_i32_0 = arith.constant 0 : i32
    %c0_i32_1 = arith.constant 0 : i32
    return %arg0, %c0_i32, %c0_i32_0 : i32, i32, i32
  }
}

</mosaic_0001>

<bundles_post_ra>
// kernel: tpu_custom_call.1
= control target key start
LH: loop header
LB: loop body
LE: loop exit
PB: predicated region body
PF: predicated region fallthrough
CT: control target
= control target key end

     0   :  { %12 = vsyncpa [#allocation3], 0  ;;  %s942_s0 = inlined_call_operand.hbm [shape: f32[1,16,32], index: 0, kind: input, shape index: {}]   ;;  %s943_s1 = inlined_call_operand.hbm [shape: bf16[32,128], index: 1, kind: input, shape index: {}]   ;;  %s944_s2 = inlined_call_operand.hbm [shape: bf16[32,128], index: 2, kind: input, shape index: {}]   ;;  %s945_s3 = inlined_call_operand.hbm [shape: bf16[32,128], index: 3, kind: input, shape index: {}]   ;;  %s946_s4 = inlined_call_operand.vmem [shape: f32[1,128], index: 4, kind: input, shape index: {}]   ;;  %s947_s5 = inlined_call_operand.hbm [shape: bf16[128,128], index: 5, kind: input, shape index: {}]   ;;  %s948_s6 = inlined_call_operand.vmem [shape: f32[1,128], index: 6, kind: input, shape index: {}]   ;;  %s949_s7 = inlined_call_operand.hbm [shape: f32[1,16,128], index: 7, kind: output, shape index: {}]  }
   0x1   :  { %13 = vsyncpa [#allocation6], 0 }
   0x2   :  { %14 = vsyncpa [#allocation9], 0 }
   0x3   :  { %15 = vsyncpa [#allocation4], 0  ;;  %s754_s24 = smov [#allocation5]   ;;  %s614_s28 = scalar_lea.hbm %s943_s1, 256 }
   0x4   :  { %s33_s25 = sshll.u32 %s754_s24, 4  ;;  %p615_p0 = scmp.ne.s32.totalorder %s943_s1, %s614_s28  ;;  %s34_s25 = int_to_ptr.vmem [resolvable:$true] %s33_s25 }
   0x5   :  { %p618_p1 = scmp.lt.u32.totalorder %s614_s28, %s943_s1 }
   0x7   :  { %p620_p2 = pnand %p618_p1, %p615_p0 }
   0x9   :  { %623 = shalt.err (!%p620_p2)
}
   0xa   :  { %s624_s10 = scalar_lea.vmem %s34_s25, 256  ;;  %p629_p4 = scmp.lt.s32.totalorder %s34_s25, %s34_s25 }
   0xb   :  { %p625_p3 = scmp.ne.s32.totalorder %s34_s25, %s624_s10  ;;  %p630_p5 = scmp.lt.s32.totalorder %s624_s10, %s624_s10 }
   0xd   :  { %p631_p6 = por %p630_p5, %p629_p4 }
   0xf   :  { %p632_p7 = pnand %p631_p6, %p625_p3 }
  0x11   :  { %635 = shalt.err (!%p632_p7)
}
  0x12   :  { %s755_s11 = smov 64   ;;  %s756_s12 = smov 4  }
  0x13   :  { %39 = dma.hbm_to_vmem [thread:$0]  %s943_s1, 256, %s34_s25, [#allocation6], %s755_s11, %s755_s11, %s756_s12  }
  0x14   :  { %s757_s15 = smov [#allocation8]   ;;  %s758_s17 = smov [#allocation2]  }
  0x15   :  { %s57_s16 = sshll.u32 %s757_s15, 4  ;;  %s21_s18 = sshll.u32 %s758_s17, 4  ;;  %s58_s16 = int_to_ptr.vmem [resolvable:$true] %s57_s16  ;;  %s22_s18 = int_to_ptr.vmem [resolvable:$true] %s21_s18 }
  0x16   :  { %s636_s21 = scalar_lea.hbm %s945_s3, 256 }
  0x17   :  { %p637_p8 = scmp.ne.s32.totalorder %s945_s3, %s636_s21  ;;  %p640_p9 = scmp.lt.u32.totalorder %s636_s21, %s945_s3 }
  0x19   :  { %p642_p10 = pnand %p640_p9, %p637_p8 }
  0x1b   :  { %645 = shalt.err (!%p642_p10)
}
  0x1c   :  { %s646_s1 = scalar_lea.vmem %s58_s16, 256  ;;  %p651_p12 = scmp.lt.s32.totalorder %s58_s16, %s58_s16 }
  0x1d   :  { %p647_p11 = scmp.ne.s32.totalorder %s58_s16, %s646_s1  ;;  %p652_p13 = scmp.lt.s32.totalorder %s646_s1, %s646_s1 }
  0x1f   :  { %p653_p0 = por %p652_p13, %p651_p12 }
  0x21   :  { %p654_p1 = pnand %p653_p0, %p647_p11 }
  0x23   :  { %657 = shalt.err (!%p654_p1)
}
  0x24   :  { %63 = dma.hbm_to_vmem [thread:$0]  %s945_s3, 256, %s58_s16, [#allocation9], %s755_s11, %s755_s11, %s756_s12  }
  0x25   :  { %s658_s30 = scalar_lea.hbm %s942_s0, 256 }
  0x26   :  { %p659_p2 = scmp.ne.s32.totalorder %s942_s0, %s658_s30  ;;  %p662_p3 = scmp.lt.u32.totalorder %s658_s30, %s942_s0 }
  0x28   :  { %p664_p4 = pnand %p662_p3, %p659_p2 }
  0x2a   :  { %667 = shalt.err (!%p664_p4)
}
  0x2b   :  { %s668_s14 = scalar_lea.vmem %s22_s18, 256  ;;  %p673_p6 = scmp.lt.s32.totalorder %s22_s18, %s22_s18 }
  0x2c   :  { %p669_p5 = scmp.ne.s32.totalorder %s22_s18, %s668_s14  ;;  %p674_p7 = scmp.lt.s32.totalorder %s668_s14, %s668_s14 }
  0x2e   :  { %p675_p8 = por %p674_p7, %p673_p6 }
  0x30   :  { %p676_p9 = pnand %p675_p8, %p669_p5 }
  0x32   :  { %679 = shalt.err (!%p676_p9)
}
  0x33   :  { %s759_s3 = smov 128   ;;  %s760_s15 = smov 8  }
  0x34   :  { %27 = dma.hbm_to_vmem [thread:$0]  %s942_s0, 256, %s22_s18, [#allocation3], %s759_s3, %s759_s3, %s760_s15  }
  0x35   :  { %s761_s19 = smov [#allocation7]   ;;  %s762_s21 = smov [#allocation10]  }
  0x36   :  { %s45_s20 = sshll.u32 %s761_s19, 4  ;;  %s71_s22 = sshll.u32 %s762_s21, 4  ;;  %s46_s20 = int_to_ptr.vmem [resolvable:$true] %s45_s20  ;;  %s72_s22 = int_to_ptr.vmem [resolvable:$true] %s71_s22 }
  0x37   :  { %s680_s26 = scalar_lea.hbm %s944_s2, 256 }
  0x38   :  { %p681_p10 = scmp.ne.s32.totalorder %s944_s2, %s680_s26  ;;  %p684_p11 = scmp.lt.u32.totalorder %s680_s26, %s944_s2 }
  0x3a   :  { %p686_p12 = pnand %p684_p11, %p681_p10 }
  0x3c   :  { %689 = shalt.err (!%p686_p12)
}
  0x3d   :  { %s690_s0 = scalar_lea.vmem %s46_s20, 256  ;;  %p695_p0 = scmp.lt.s32.totalorder %s46_s20, %s46_s20 }
  0x3e   :  { %p691_p13 = scmp.ne.s32.totalorder %s46_s20, %s690_s0  ;;  %p696_p1 = scmp.lt.s32.totalorder %s690_s0, %s690_s0 }
  0x40   :  { %p697_p2 = por %p696_p1, %p695_p0 }
  0x42   :  { %p698_p3 = pnand %p697_p2, %p691_p13 }
  0x44   :  { %701 = shalt.err (!%p698_p3)
}
  0x45   :  { %51 = dma.hbm_to_vmem [thread:$0]  %s944_s2, 256, %s46_s20, [#allocation6], %s755_s11, %s755_s11, %s756_s12  }
  0x46   :  { %s702_s9 = scalar_lea.hbm %s947_s5, 1024 }
  0x47   :  { %p703_p4 = scmp.ne.s32.totalorder %s947_s5, %s702_s9  ;;  %p706_p5 = scmp.lt.u32.totalorder %s702_s9, %s947_s5 }
  0x49   :  { %p708_p6 = pnand %p706_p5, %p703_p4 }
  0x4b   :  { %711 = shalt.err (!%p708_p6)
}
  0x4c   :  { %s712_s17 = scalar_lea.vmem %s72_s22, 1024  ;;  %p717_p8 = scmp.lt.s32.totalorder %s72_s22, %s72_s22 }
  0x4d   :  { %p713_p7 = scmp.ne.s32.totalorder %s72_s22, %s712_s17  ;;  %p718_p9 = scmp.lt.s32.totalorder %s712_s17, %s712_s17 }
  0x4f   :  { %p719_p10 = por %p718_p9, %p717_p8 }
  0x51   :  { %p720_p11 = pnand %p719_p10, %p713_p7 }
  0x53   :  { %723 = shalt.err (!%p720_p11)
}
  0x54   :  { %77 = dma.hbm_to_vmem [thread:$0]  %s947_s5, 1024, %s72_s22, [#allocation9], %s755_s11, %s755_s11, %s756_s12  }
  0x55   :  { %746 = dma.done.wait [#allocation3], 256  }
  0x56   :  { %747 = vsyncadd [#allocation3], 4294967040 }
  0x57   :  { %748 = dma.done.wait [#allocation6], 512  }
  0x58   :  { %749 = vsyncadd [#allocation6], 4294966784 }
  0x59   :  { %750 = dma.done.wait [#allocation9], 1280  }
  0x5a   :  { %751 = vsyncadd [#allocation9], 4294966016  ;;  %v101_v0 = vlaneseq  ;;  %v763_v1 = vmov 0.0   ;;  %vm764_vm0 = vmmov 0   ;;  %v600_v6 = vld [vmem:[#allocation5] sm:$0xff]   ;;  %v601_v7 = vld [vmem:[#allocation5 + $0x8] sm:$0xff]  }
  0x5b   :  { %543 = vmatprep.subr.bf16.mxu0 %v763_v1  ;;  %547 = vmatprep.mubr.msk.bf16.mxu0 %vm764_vm0, %v763_v1  ;;  %v98_v8 = vld [vmem:[#allocation2] sm:$0xff]  ;;  %v99_v9 = vld [vmem:[#allocation2 + $0x8] sm:$0xff]  ;;  %v765_v11 = vmov 0   ;;  %vm153_vm5 = vcmask 1040384   ;;  %vm154_vm6 = vsmask.f32 256 }
  0x5c   :  { %v102_v2 = vshrl.u32 %v101_v0, 7  ;;  %567 = vmatprep.subr.bf16.mxu1 %v763_v1  ;;  %583 = vmatprep.mubr.msk.bf16.mxu1 %vm764_vm0, %v763_v1  ;;  %v100_v10 = vpack.c.bf16 %v99_v9, %v98_v8  ;;  %vm155_vm7 = vmand %vm153_vm5, %vm154_vm6  ;;  %vm202_vm8 = vcmask 261120   ;;  %v606_v20 = vld [vmem:[#allocation10] sm:$0xff]   ;;  %v603_v25 = vld [vmem:[#allocation7 + $0x8] sm:$0xff]   ;;  %vm160_vm14 = vcmask 1047552   ;;  %s766_s21 = smov [#allocation11]  }
  0x5d   :  { %544 = vmatpush3.bf16.msra.mxu0 %v600_v6  ;;  %v602_v22 = vld [vmem:[#allocation7] sm:$0xff]   ;;  %568 = vmatpush3.bf16.msra.mxu1 %v606_v20  ;;  %vm161_vm15 = vsmask.f32 7424  ;;  %v604_v29 = vld [vmem:[#allocation8] sm:$0xff]   ;;  %v605_v32 = vld [vmem:[#allocation8 + $0x8] sm:$0xff]   ;;  %s490_s22 = sshll.u32 %s766_s21, 4  ;;  %s491_s22 = int_to_ptr.vmem [resolvable:$true] %s490_s22 }
  0x5e   :  { %v103_v3 = vadd.s32 8, %v102_v2  ;;  %v108_v4 = vand.u32 7, %v102_v2  ;;  %545 = vmatprep.subr.bf16.mxu0 %v763_v1  ;;  %v146_v14 = vshrl.u32 %v100_v10, 16  ;;  %v149_v15 = vshll.u32 %v100_v10, 16  ;;  %569 = vmatprep.subr.bf16.mxu1 %v763_v1  ;;  %v607_v35 = vld [vmem:[#allocation10 + $0x8] sm:$0xff]   ;;  %v608_v36 = vld [vmem:[#allocation10 + $0x10] sm:$0xff]   ;;  %p729_p13 = scmp.lt.s32.totalorder %s491_s22, %s491_s22 }
  0x5f   :  { %v609_v37 = vld [vmem:[#allocation10 + $0x18] sm:$0xff]   ;;  %v610_v38 = vld [vmem:[#allocation10 + $0x20] sm:$0xff]   ;;  %v611_v39 = vld [vmem:[#allocation10 + $0x28] sm:$0xff]  }
  0x60   :  { %v115_v5 = vand.u32 7, %v103_v3  ;;  %vm128_vm1 = vcmp.eq.s32.totalorder %v108_v4, 0  ;;  %v148_v17 = vrot.slane %v146_v14, 7  ;;  %vm890_vm9 = vcmp.eq.s32.totalorder %v108_v4, 7  ;;  %v612_v40 = vld [vmem:[#allocation10 + $0x30] sm:$0xff]   ;;  %v613_v41 = vld [vmem:[#allocation10 + $0x38] sm:$0xff]  }
  0x61   :  { %vm168_vm3 = vmpackc.low %vm128_vm1, %vm128_vm1  ;;  %546 = vmatpush3.bf16.msra.mxu0 %v601_v7  ;;  %v157_v26 = vrot.slane %v149_v15, 1  ;;  %570 = vmatpush3.bf16.msra.mxu1 %v607_v35  ;;  %v515_v52 = vld [vmem:[%s946_s4] ss:$0 sm:$0xff]  ;;  %s724_s4 = scalar_lea.vmem %s491_s22, 256 }
  0x62   :  { %vm129_vm2 = vcmp.eq.s32.totalorder %v115_v5, 0  ;;  %v170_v12 = vsel %vm168_vm3, 65537, %v765_v11  ;;  %551 = vmatprep.subr.bf16.mxu0 %v763_v1  ;;  %vm894_vm10 = vcmp.eq.s32.totalorder %v115_v5, 7  ;;  %v151_v21 = vor.u32 %v149_v15, %v148_v17  ;;  %vm181_vm12 = vmpackc.low %vm890_vm9, %vm890_vm9  ;;  %571 = vmatprep.subr.bf16.mxu1 %v763_v1  ;;  %v516_v0 = vld [vmem:[%s948_s6] ss:$0 sm:$0xff]  ;;  %p725_p12 = scmp.ne.s32.totalorder %s491_s22, %s724_s4  ;;  %p730_p0 = scmp.lt.s32.totalorder %s724_s4, %s724_s4 }
  0x63   :  { %vm169_vm4 = vmpackc.low %vm129_vm2, %vm129_vm2  ;;  %v183_v27 = vsel %vm181_vm12, 65537, %v765_v11  ;;  %v158_v30 = vor.u32 %v157_v26, %v146_v14 }
  0x64   :  { %v171_v13 = vsel %vm169_vm4, 65537, %v765_v11  ;;  %v156_v23 = vsel %vm155_vm7, 0, %v151_v21  ;;  %vm182_vm13 = vmpackc.low %vm894_vm10, %vm894_vm10  ;;  %p731_p1 = por %p730_p0, %p729_p13 }
  0x65   :  { %v504_v16 = vcombine.low %v170_v12, %v171_v13  ;;  %v184_v28 = vsel %vm182_vm13, 65537, %v765_v11  ;;  %vm162_vm1 = vmand %vm160_vm14, %vm161_vm15  ;;  %572 = vmatpush3.bf16.msra.mxu1 %v608_v36 }
  0x66   :  { %v505_v31 = vcombine.low %v183_v27, %v184_v28  ;;  %v163_v33 = vsel %vm162_vm1, %v158_v30, 0  ;;  %573 = vmatprep.subr.bf16.mxu1 %v763_v1  ;;  %p732_p2 = pnand %p731_p1, %p725_p12 }
  0x67   :  { %vm175_vm11 = vcmp.ne.s16.totalorder %v504_v16, 0 }
  0x68   :  { %v176_v24 = vsel %vm175_vm11, 0, %v156_v23  ;;  %vm188_vm2 = vcmp.ne.s16.totalorder %v505_v31, 0 }
  0x69   :  { %548 = vmatmul.mubr.msk.bf16.vlgmr.msra.gmra.mrb[0].mxu0 %vm202_vm8, %v176_v24  ;;  %v189_v34 = vsel %vm188_vm2, 0, %v163_v33  ;;  %574 = vmatpush3.bf16.msra.mxu1 %v609_v37 }
  0x6a   :  { %552 = vmatpush3.bf16.msra.mxu0 %v602_v22  ;;  %555 = vmatprep.mubr.msk.bf16.mxu0 %vm764_vm0, %v763_v1 }
  0x6b   :  { %553 = vmatprep.subr.bf16.mxu0 %v763_v1  ;;  %575 = vmatprep.subr.bf16.mxu1 %v763_v1 }
  0x6d   :  { %576 = vmatpush3.bf16.msra.mxu1 %v610_v38 }
  0x6e   :  { %554 = vmatpush3.bf16.msra.mxu0 %v603_v25  ;;  %577 = vmatprep.subr.bf16.mxu1 %v763_v1 }
  0x6f   :  { %559 = vmatprep.subr.bf16.mxu0 %v763_v1 }
  0x71   :  { %556 = vmatmul.mubr.msk.bf16.vlgmr.msra.gmra.mrb[4].mxu0 %vm202_vm8, %v100_v10  ;;  %578 = vmatpush3.bf16.msra.mxu1 %v611_v39 }
  0x72   :  { %560 = vmatpush3.bf16.msra.mxu0 %v604_v29  ;;  %563 = vmatprep.mubr.msk.bf16.mxu0 %vm764_vm0, %v763_v1 }
  0x73   :  { %561 = vmatprep.subr.bf16.mxu0 %v763_v1  ;;  %579 = vmatprep.subr.bf16.mxu1 %v763_v1 }
  0x75   :  { %580 = vmatpush3.bf16.msra.mxu1 %v612_v40 }
  0x76   :  { %562 = vmatpush3.bf16.msra.mxu0 %v605_v32  ;;  %581 = vmatprep.subr.bf16.mxu1 %v763_v1 }
  0x79   :  { %564 = vmatmul.mubr.msk.bf16.vlgmr.msra.gmra.mrb[8].mxu0 %vm202_vm8, %v189_v34  ;;  %582 = vmatpush3.bf16.msra.mxu1 %v613_v41 }
 0x13c   :  { %v240_v42 = vpop.f32.mrb[0].mxu0 }
 0x13d   :  { %v549_v43 = vpop.f32.mrb[1].mxu0 }
 0x13e   :  { %v243_v44 = vpop.f32.mrb[2].mxu0 }
 0x13f   :  { %v550_v45 = vpop.f32.mrb[3].mxu0 }
 0x144   :  { %v295_v46 = vpop.f32.mrb[4].mxu0 }
 0x145   :  { %v296_v47 = vadd.f32 %v295_v46, %v240_v42  ;;  %v557_v48 = vpop.f32.mrb[5].mxu0 }
 0x146   :  { %v298_v49 = vpop.f32.mrb[6].mxu0 }
 0x147   :  { %v299_v50 = vadd.f32 %v298_v49, %v243_v44  ;;  %v558_v51 = vpop.f32.mrb[7].mxu0 }
 0x14c   :  { %v351_v53 = vpop.f32.mrb[8].mxu0 }
 0x14d   :  { %v358_v54 = vadd.f32 %v351_v53, %v296_v47  ;;  %v565_v55 = vpop.f32.mrb[9].mxu0 }
 0x14e   :  { %v354_v56 = vpop.f32.mrb[10].mxu0 }
 0x14f   :  { %v366_v57 = vadd.f32 %v515_v52, %v358_v54  ;;  %v359_v58 = vadd.f32 %v354_v56, %v299_v50  ;;  %v566_v59 = vpop.f32.mrb[11].mxu0 }
 0x151   :  { %v367_v60 = vadd.f32 %v515_v52, %v359_v58  ;;  %v368_v61 = vmax.f32 %v366_v57, 0.0 }
 0x153   :  { %v369_v62 = vmax.f32 %v367_v60, 0.0 }
 0x155   :  { %v370_v63 = vpack.c.bf16 %v369_v62, %v368_v61 }
 0x157   :  { %584 = vmatmul.mubr.bf16.vlgmr.msra.gmra.mrb[0].mxu1 %v370_v63 }
 0x22a   :  { %v476_v1 = vpop.f32.mrb[0].mxu1 }
 0x22b   :  { %v477_v2 = vadd.f32 %v516_v0, %v476_v1  ;;  %v585_v3 = vpop.f32.mrb[1].mxu1 }
 0x22c   :  { %v479_v4 = vpop.f32.mrb[2].mxu1 }
 0x22d   :  { %483 = vst [vmem:[#allocation11] sm:$0xff] %v477_v2  ;;  %v480_v5 = vadd.f32 %v516_v0, %v479_v4  ;;  %v586_v6 = vpop.f32.mrb[3].mxu1 }
 0x22f   :  { %484 = vst [vmem:[#allocation11 + $0x8] sm:$0xff] %v480_v5 }
 0x230   :  { %735 = shalt.err (!%p732_p2)
}
 0x231   :  { %s736_s24 = scalar_lea.hbm %s949_s7, 256 }
 0x232   :  { %p737_p3 = scmp.ne.s32.totalorder %s949_s7, %s736_s24  ;;  %p740_p4 = scmp.lt.u32.totalorder %s736_s24, %s949_s7 }
 0x234   :  { %p742_p5 = pnand %p740_p4, %p737_p3 }
 0x236   :  { %745 = shalt.err (!%p742_p5)
}
 0x237   :  { %496 = dma.vmem_to_hbm [thread:$0]  %s491_s22, 256, %s949_s7, [#allocation4], %s759_s3, %s759_s3, %s760_s15  }
 0x238   :  { %752 = dma.done.wait [#allocation4], 256  }
 0x239   :  { %753 = vsyncadd [#allocation4], 4294967040 }
 0x23a   :  { %500 = vsyncpa [#allocation3], 1 }
 0x23b   :  { %501 = vsyncpa [#allocation6], 1 }
 0x23c   :  { %502 = vsyncpa [#allocation9], 1 }
 0x23d   :  { %503 = vsyncpa [#allocation4], 1 }

</bundles_post_ra>
